<compile_context>
chip_gen: v5e
topology: v5e:2x2
jax: 0.10.0
libtpu: 0.0.40
codegen_flags: <defaults>
</compile_context>

<pallas_src>
import jax
import jax.numpy as jnp
from jax.experimental import pallas as pl
from jax.experimental.pallas import tpu as pltpu

# ---- static layout constants -------------------------------------------------
_IN, _HID, _OUT = 2, 50, 2          # logical sizes (match the torch module)
_HID_PAD = 64                       # hidden padded to a multiple of 8 sublanes
_SLAB_ROWS = 64                     # parameter slab rows (multiple of 8)
_SLAB_COLS = 128                    # one full lane tile

# lane offsets of the packed column vectors inside the slab (W2 sits in 0:64)
_C_W1_0 = 64                        # W1[:, 0]
_C_W1_1 = 65                        # W1[:, 1]
_C_B1 = 66                          # b1
_C_B2 = 67                          # b2
_C_WD = 68                          # W3[0,:] - W3[1,:]  (logit-difference weights)
_C_BD = 69                          # b3[0]  - b3[1]     (row 0 only)
_C_SGN = 70                         # [+1, -1]           (rows 0,1)

_TB_MAX = 8192                      # max batch-tile width (lanes)


def _round_up(n, m):
    return (n + m - 1) // m * m


def _mlp_softmax_kernel(x_ref, p_ref, o_ref):
    # ---- VMEM-resident parameters: static slices of the slab (no runtime cost)
    w2 = p_ref[0:_HID_PAD, 0:_HID_PAD]                  # (64, 64) f32
    w1a = p_ref[0:_HID_PAD, _C_W1_0:_C_W1_0 + 1]        # (64, 1)
    w1b = p_ref[0:_HID_PAD, _C_W1_1:_C_W1_1 + 1]        # (64, 1)
    b1 = p_ref[0:_HID_PAD, _C_B1:_C_B1 + 1]             # (64, 1)
    b2 = p_ref[0:_HID_PAD, _C_B2:_C_B2 + 1]             # (64, 1)
    wd = p_ref[0:_HID_PAD, _C_WD:_C_WD + 1]             # (64, 1)  W3[0]-W3[1]
    bd = p_ref[0:1, _C_BD:_C_BD + 1]                    # (1, 1)   b3[0]-b3[1]
    sgn = p_ref[0:_OUT, _C_SGN:_C_SGN + 1]              # (2, 1)   [+1, -1]

    # ---- input tile: feature-major, batch on lanes (only the 2 real rows)
    x0 = x_ref[0:1, :]                                  # (1, TB)
    x1 = x_ref[1:2, :]                                  # (1, TB)

    # Layer 1: Linear(2,50)+ReLU as two broadcast-FMAs on the VPU.
    h1 = jnp.maximum(w1a * x0 + w1b * x1 + b1, 0.0)     # (64, TB) f32

    # Layer 2: Linear(50,50)+ReLU, single-pass bf16 MXU with f32 accumulation.
    h2 = jnp.dot(w2.astype(jnp.bfloat16), h1.astype(jnp.bfloat16),
                 preferred_element_type=jnp.float32) + b2
    h2 = jnp.maximum(h2, 0.0)                           # (64, TB) f32

    # Layer 3 + 2-class softmax without a second MXU stream:
    #   softmax([l0, l1]) == [sigmoid(l0-l1), sigmoid(l1-l0)]   (exact identity)
    #   l0 - l1 = (W3[0]-W3[1]) . h2 + (b3[0]-b3[1])
    d = jnp.sum(wd * h2, axis=0, keepdims=True) + bd    # (1, TB) VPU mul + sublane reduce
    d2 = sgn * d                                        # (2, TB): row0=+d, row1=-d
    probs = pl.reciprocal(1.0 + jnp.exp(-d2), approx=False)   # sigmoid; exp on EUP
    o_ref[...] = probs.astype(o_ref.dtype)              # single lane-dense store


def pack_params(params):
    """Pack PyTorch-convention params (W: (out,in), b: (out,)) into one padded
    (64, 128) f32 slab.  Zero padding is inert through matmul / bias / ReLU."""
    w1, b1 = params["w1"], params["b1"]   # (50, 2), (50,)
    w2, b2 = params["w2"], params["b2"]   # (50, 50), (50,)
    w3, b3 = params["w3"], params["b3"]   # (2, 50), (2,)
    f32 = jnp.float32
    slab = jnp.zeros((_SLAB_ROWS, _SLAB_COLS), f32)
    slab = slab.at[0:_HID, 0:_HID].set(w2.astype(f32))
    slab = slab.at[0:_HID, _C_W1_0].set(w1[:, 0].astype(f32))
    slab = slab.at[0:_HID, _C_W1_1].set(w1[:, 1].astype(f32))
    slab = slab.at[0:_HID, _C_B1].set(b1.astype(f32))
    slab = slab.at[0:_HID, _C_B2].set(b2.astype(f32))
    # Layer 3 is folded into a logit difference (see kernel).
    slab = slab.at[0:_HID, _C_WD].set((w3[0, :] - w3[1, :]).astype(f32))
    slab = slab.at[0, _C_BD].set((b3[0] - b3[1]).astype(f32))
    slab = slab.at[0, _C_SGN].set(1.0)
    slab = slab.at[1, _C_SGN].set(-1.0)
    return slab


def _choose_batch_tile(B):
    """Pick a batch tile (lanes).  Big enough to amortise the ~0.35us per-step
    pipeline overhead; small enough to keep >=2 grid steps (both v7x TCs busy)."""
    b128 = _round_up(max(B, 1), 128)
    if b128 <= 128:
        return 128
    return min(_TB_MAX, _round_up(pl.cdiv(b128, 2), 128))


def net_forward_fm(xt, param_slab):
    """Feature-major entry point: xt is (2, B) f32; returns (2, B) softmax probs.
    Prefer this layout when possible to avoid wrapper-side transposes over HBM."""
    _, B = xt.shape
    TB = _choose_batch_tile(B)
    B_pad = _round_up(B, TB)
    xt = xt.astype(jnp.float32)
    if B_pad != B:
        xt = jnp.pad(xt, ((0, 0), (0, B_pad - B)))

    out = pl.pallas_call(
        _mlp_softmax_kernel,
        out_shape=jax.ShapeDtypeStruct((_OUT, B_pad), jnp.float32),
        grid=(B_pad // TB,),
        in_specs=[
            pl.BlockSpec((_IN, TB), lambda i: (0, i)),                 # batch-tiled x (2 rows)
            pl.BlockSpec((_SLAB_ROWS, _SLAB_COLS), lambda i: (0, 0)),  # VMEM-resident params
        ],
        out_specs=pl.BlockSpec((_OUT, TB), lambda i: (0, i)),
        compiler_params=pltpu.CompilerParams(
            dimension_semantics=("parallel",),          # megacore split on v7x
            vmem_limit_bytes=48 * 1024 * 1024,          # large tiles fit on v5e too
        ),
    )(xt, param_slab)
    return out[:, :B]


def net_forward(x, param_slab):
    """PyTorch-layout entry point: x (B, 2) float32 -> (B, 2) softmax probs."""
    return net_forward_fm(x.astype(jnp.float32).T, param_slab).T


def init_params(key):
    """PyTorch nn.Linear-style init: W (out,in), b (out,), uniform +/- 1/sqrt(fan_in)."""
    k = jax.random.split(key, 6)

    def lin(kw, kb, fan_in, fan_out):
        bound = 1.0 / jnp.sqrt(jnp.float32(fan_in))
        w = jax.random.uniform(kw, (fan_out, fan_in), jnp.float32, -bound, bound)
        b = jax.random.uniform(kb, (fan_out,), jnp.float32, -bound, bound)
        return w, b

    w1, b1 = lin(k[0], k[1], 2, 50)
    w2, b2 = lin(k[2], k[3], 50, 50)
    w3, b3 = lin(k[4], k[5], 50, 2)
    return {"w1": w1, "b1": b1, "w2": w2, "b2": b2, "w3": w3, "b3": b3}


def _reference_forward(x, p):
    h1 = jnp.maximum(x @ p["w1"].T + p["b1"], 0.0)
    h2 = jnp.maximum(h1 @ p["w2"].T + p["b2"], 0.0)
    logits = h2 @ p["w3"].T + p["b3"]
    return jax.nn.softmax(logits, axis=1)


if __name__ == "__main__":
    key = jax.random.PRNGKey(0)
    k_params, k_x1, k_x2 = jax.random.split(key, 3)

    params = init_params(k_params)
    slab = pack_params(params)

    # Small torch-like batch (B=8, in_features=2): single grid step.
    x = jax.random.normal(k_x1, (8, 2), jnp.float32)
    out = jax.block_until_ready(net_forward(x, slab))
    ref = _reference_forward(x, params)
    assert out.shape == (8, 2)
    # Layer-2 MXU operands are bf16 -> compare to the f32 reference at a loosened tol.
    assert jnp.allclose(out, ref, atol=2e-2)
    assert jnp.allclose(jnp.sum(out, axis=1), jnp.ones((8,)), atol=1e-5)

    # A batch that exercises the multi-step grid and batch padding paths.
    x2 = jax.random.normal(k_x2, (300, 2), jnp.float32)
    out2 = jax.block_until_ready(net_forward(x2, slab))
    ref2 = _reference_forward(x2, params)
    assert out2.shape == (300, 2)
    assert jnp.allclose(out2, ref2, atol=2e-2)
    assert jnp.allclose(jnp.sum(out2, axis=1), jnp.ones((300,)), atol=1e-5)

    print("KERNEL_OK")
</pallas_src>

<mosaic_0001>
module attributes {stable_mosaic.version = 11 : i64} {
  func.func @_mlp_softmax_kernel(%arg0: i32, %arg1: memref<2x128xf32, #tpu.memory_space<vmem>>, %arg2: memref<64x128xf32, #tpu.memory_space<vmem>>, %arg3: memref<2x128xf32, #tpu.memory_space<vmem>>) attributes {dimension_semantics = [#tpu.dimension_semantics<parallel>], iteration_bounds = array<i64: 1>, scalar_prefetch = 0 : i64, scratch_operands = 0 : i64, tpu.core_type = #tpu.core_type<tc>, window_params = [{transform_indices = @transform_0, window_bounds = array<i64: 2, 128>}, {pipeline_mode = #tpu.pipeline_mode<synchronous>, transform_indices = @transform_1, window_bounds = array<i64: 64, 128>}, {transform_indices = @transform_2, window_bounds = array<i64: 2, 128>}]} {
    %c0 = arith.constant 0 : index
    %c0_0 = arith.constant 0 : index
    %0 = vector.load %arg2[%c0, %c0_0] : memref<64x128xf32, #tpu.memory_space<vmem>>, vector<64x64xf32>
    %c0_1 = arith.constant 0 : index
    %c64 = arith.constant 64 : index
    %1 = vector.load %arg2[%c0_1, %c64] : memref<64x128xf32, #tpu.memory_space<vmem>>, vector<64x1xf32>
    %c0_2 = arith.constant 0 : index
    %c65 = arith.constant 65 : index
    %2 = vector.load %arg2[%c0_2, %c65] : memref<64x128xf32, #tpu.memory_space<vmem>>, vector<64x1xf32>
    %c0_3 = arith.constant 0 : index
    %c66 = arith.constant 66 : index
    %3 = vector.load %arg2[%c0_3, %c66] : memref<64x128xf32, #tpu.memory_space<vmem>>, vector<64x1xf32>
    %c0_4 = arith.constant 0 : index
    %c67 = arith.constant 67 : index
    %4 = vector.load %arg2[%c0_4, %c67] : memref<64x128xf32, #tpu.memory_space<vmem>>, vector<64x1xf32>
    %c0_5 = arith.constant 0 : index
    %c68 = arith.constant 68 : index
    %5 = vector.load %arg2[%c0_5, %c68] : memref<64x128xf32, #tpu.memory_space<vmem>>, vector<64x1xf32>
    %c0_6 = arith.constant 0 : index
    %c69 = arith.constant 69 : index
    %6 = vector.load %arg2[%c0_6, %c69] : memref<64x128xf32, #tpu.memory_space<vmem>>, vector<1x1xf32>
    %c0_7 = arith.constant 0 : index
    %c70 = arith.constant 70 : index
    %7 = vector.load %arg2[%c0_7, %c70] : memref<64x128xf32, #tpu.memory_space<vmem>>, vector<2x1xf32>
    %c0_8 = arith.constant 0 : index
    %c0_9 = arith.constant 0 : index
    %8 = vector.load %arg1[%c0_8, %c0_9] : memref<2x128xf32, #tpu.memory_space<vmem>>, vector<1x128xf32>
    %c1 = arith.constant 1 : index
    %c0_10 = arith.constant 0 : index
    %9 = vector.load %arg1[%c1, %c0_10] : memref<2x128xf32, #tpu.memory_space<vmem>>, vector<1x128xf32>
    %10 = vector.broadcast %1 : vector<64x1xf32> to vector<64x128xf32>
    %11 = vector.broadcast %8 : vector<1x128xf32> to vector<64x128xf32>
    %12 = arith.mulf %10, %11 : vector<64x128xf32>
    %13 = vector.broadcast %2 : vector<64x1xf32> to vector<64x128xf32>
    %14 = vector.broadcast %9 : vector<1x128xf32> to vector<64x128xf32>
    %15 = arith.mulf %13, %14 : vector<64x128xf32>
    %16 = arith.addf %12, %15 : vector<64x128xf32>
    %17 = vector.broadcast %3 : vector<64x1xf32> to vector<64x128xf32>
    %18 = arith.addf %16, %17 : vector<64x128xf32>
    %cst = arith.constant 0.000000e+00 : f32
    %19 = vector.broadcast %cst : f32 to vector<64x128xf32>
    %20 = arith.maximumf %18, %19 : vector<64x128xf32>
    %21 = arith.truncf %0 : vector<64x64xf32> to vector<64x64xbf16>
    %22 = arith.truncf %20 : vector<64x128xf32> to vector<64x128xbf16>
    %cst_11 = arith.constant dense<0.000000e+00> : vector<64x128xf32>
    %23 = tpu.matmul %21, %22, %cst_11 {dimension_numbers = #tpu.dot_dimension_numbers<[1], [0], [0], [1], [0, 0, 1, 1], [], []>} : vector<64x64xbf16>, vector<64x128xbf16>, vector<64x128xf32> -> vector<64x128xf32>
    %24 = vector.broadcast %4 : vector<64x1xf32> to vector<64x128xf32>
    %25 = arith.addf %23, %24 : vector<64x128xf32>
    %cst_12 = arith.constant 0.000000e+00 : f32
    %26 = vector.broadcast %cst_12 : f32 to vector<64x128xf32>
    %27 = arith.maximumf %25, %26 : vector<64x128xf32>
    %28 = vector.broadcast %5 : vector<64x1xf32> to vector<64x128xf32>
    %29 = arith.mulf %28, %27 : vector<64x128xf32>
    %cst_13 = arith.constant dense<0.000000e+00> : vector<128xf32>
    %30 = vector.multi_reduction <add>, %29, %cst_13 [0] : vector<64x128xf32> to vector<128xf32>
    %31 = vector.shape_cast %30 : vector<128xf32> to vector<1x128xf32>
    %32 = vector.broadcast %6 : vector<1x1xf32> to vector<1x128xf32>
    %33 = arith.addf %31, %32 : vector<1x128xf32>
    %34 = vector.broadcast %7 : vector<2x1xf32> to vector<2x128xf32>
    %35 = vector.broadcast %33 : vector<1x128xf32> to vector<2x128xf32>
    %36 = arith.mulf %34, %35 : vector<2x128xf32>
    %cst_14 = arith.constant 0.000000e+00 : f32
    %37 = vector.broadcast %cst_14 : f32 to vector<2x128xf32>
    %38 = arith.subf %37, %36 : vector<2x128xf32>
    %39 = math.exp %38 : vector<2x128xf32>
    %cst_15 = arith.constant 1.000000e+00 : f32
    %40 = vector.broadcast %cst_15 : f32 to vector<2x128xf32>
    %41 = arith.addf %40, %39 : vector<2x128xf32>
    %42 = tpu.reciprocal %41 : vector<2x128xf32> -> vector<2x128xf32>
    %c0_16 = arith.constant 0 : index
    %c0_17 = arith.constant 0 : index
    %43 = vector.load %arg3[%c0_16, %c0_17] : memref<2x128xf32, #tpu.memory_space<vmem>>, vector<2x128xf32>
    tpu.vector_store %arg3[%c0_16, %c0_17], %42 {strides = array<i32>} : memref<2x128xf32, #tpu.memory_space<vmem>>, vector<2x128xf32>,
    return
  }
  func.func @transform_0(%arg0: i32) -> (i32, i32) {
    %c0_i32 = arith.constant 0 : i32
    %c0_i32_0 = arith.constant 0 : i32
    return %c0_i32, %arg0 : i32, i32
  }
  func.func @transform_1(%arg0: i32) -> (i32, i32) {
    %c0_i32 = arith.constant 0 : i32
    %c0_i32_0 = arith.constant 0 : i32
    %c0_i32_1 = arith.constant 0 : i32
    return %c0_i32, %c0_i32_0 : i32, i32
  }
  func.func @transform_2(%arg0: i32) -> (i32, i32) {
    %c0_i32 = arith.constant 0 : i32
    %c0_i32_0 = arith.constant 0 : i32
    return %c0_i32, %arg0 : i32, i32
  }
}

</mosaic_0001>

<bundles_post_ra>
// kernel: tpu_custom_call.1
= control target key start
LH: loop header
LB: loop body
LE: loop exit
PB: predicated region body
PF: predicated region fallthrough
CT: control target
= control target key end

     0   :  { %7 = vsyncpa [#allocation3], 0  ;;  %s665_s0 = inlined_call_operand.hbm [shape: f32[2,128], index: 0, kind: input, shape index: {}]   ;;  %s666_s1 = inlined_call_operand.hbm [shape: f32[64,128], index: 1, kind: input, shape index: {}]   ;;  %s667_s2 = inlined_call_operand.hbm [shape: f32[2,128], index: 2, kind: output, shape index: {}]  }
   0x1   :  { %8 = vsyncpa [#allocation6], 0 }
   0x2   :  { %9 = vsyncpa [#allocation4], 0  ;;  %s15_s11 = sshll.u32 %s665_s0, 4  ;;  %s533_s12 = smov [#allocation2]   ;;  %s16_s11 = int_to_ptr.hbm [resolvable:$true] %s15_s11 }
   0x3   :  { %s17_s13 = sshll.u32 %s533_s12, 4  ;;  %s25_s16 = sshll.u32 %s666_s1, 4  ;;  %s18_s13 = int_to_ptr.vmem [resolvable:$true] %s17_s13  ;;  %s26_s16 = int_to_ptr.hbm [resolvable:$true] %s25_s16 }
   0x4   :  { %20 = dma.hbm_to_vmem [thread:$0]  %s16_s11, 32, %s18_s13, [#allocation3]  }
   0x5   :  { %s534_s17 = smov [#allocation5]   ;;  %s535_s19 = smov 128  }
   0x6   :  { %s27_s18 = sshll.u32 %s534_s17, 4  ;;  %s536_s20 = smov 8   ;;  %s28_s18 = int_to_ptr.vmem [resolvable:$true] %s27_s18 }
   0x7   :  { %33 = dma.hbm_to_vmem [thread:$0]  %s26_s16, 1024, %s28_s18, [#allocation6], %s535_s19, %s535_s19, %s536_s20  }
   0x8   :  { %527 = dma.done.wait [#allocation3], 32  }
   0x9   :  { %528 = vsyncadd [#allocation3], 4294967264 }
   0xa   :  { %529 = dma.done.wait [#allocation6], 1024  }
   0xb   :  { %530 = vsyncadd [#allocation6], 4294966272  ;;  %v537_v0 = vmov 65   ;;  %v538_v1 = vmov 64   ;;  %v566_v2 = vld [vmem:[#allocation5 + $0x30] sm:$0xff]  ;;  %v568_v3 = vld [vmem:[#allocation5 + $0x20] sm:$0xff] }
   0xc   :  { %423 = vset.pattern.permute.xlu1 %v537_v0  ;;  %424 = vset.pattern.permute.xlu2 %v538_v1  ;;  %v573_v4 = vld [vmem:[#allocation5 + $0x38] sm:$0xff]  ;;  %v575_v5 = vld [vmem:[#allocation5 + $0x28] sm:$0xff]  ;;  %v539_v7 = vmov 66   ;;  %v585_v8 = vld [vmem:[#allocation5] sm:$0xff]  ;;  %v540_v20 = vmov 67   ;;  %v541_v52 = vmov 68  }
   0xd   :  { %422 = vset.pattern.permute.xlu0 %v538_v1  ;;  %129 = vperm.xlu1 %423, %v566_v2   ;;  %v580_v6 = vld [vmem:[#allocation5 + $0x18] sm:$0xff]  ;;  %v588_v9 = vld [vmem:[#allocation5 + $0x10] sm:$0xff]  ;;  %v595_v10 = vld [vmem:[#allocation5 + $0x8] sm:$0xff]  ;;  %vm241_vm0 = vcmask 523264   ;;  %s544_s0 = smov [#allocation7]   ;;  %s383_s23 = sshll.u32 %s667_s2, 4  ;;  %s384_s23 = int_to_ptr.hbm [resolvable:$true] %s383_s23 }
   0xe   :  { %87 = vperm.xlu0 %422, %v566_v2   ;;  %77 = vperm.xlu2 %424, %v568_v3   ;;  %v606_v18 = vld [vmem:[#allocation2] ss:$0 sm:$0xff]  ;;  %v608_v19 = vld [vmem:[#allocation2 + $0x1] ss:$0 sm:$0xff]  ;;  %s381_s1 = sshll.u32 %s544_s0, 4  ;;  %s382_s1 = int_to_ptr.vmem [resolvable:$true] %s381_s1 }
  0x15   :  { %133 = vperm.xlu1 %423, %v573_v4  }
  0x16   :  { %92 = vperm.xlu0 %422, %v573_v4   ;;  %82 = vperm.xlu2 %424, %v575_v5  }
  0x1d   :  { %125 = vperm.xlu1 %423, %v575_v5  }
  0x1e   :  { %72 = vperm.xlu0 %422, %v580_v6   ;;  %425 = vset.pattern.permute.xlu2 %v539_v7 }
  0x1f   :  { %178 = vperm.xlu2 %425, %v566_v2  }
  0x25   :  { %426 = vset.pattern.permute.xlu1 %v539_v7 }
  0x26   :  { %57 = vperm.xlu0 %422, %v585_v8   ;;  %182 = vperm.xlu1 %426, %v573_v4  }
  0x27   :  { %427 = vset.pattern.permute.xlu2 %v538_v1 }
  0x28   :  { %67 = vperm.xlu2 %427, %v588_v9  }
  0x2e   :  { %432 = vset.pattern.permute.xlu0 %v537_v0  ;;  %428 = vset.pattern.permute.xlu1 %v537_v0 }
  0x2f   :  { %121 = vperm.xlu0 %432, %v568_v3   ;;  %113 = vperm.xlu1 %428, %v588_v9  }
  0x30   :  { %429 = vset.pattern.permute.xlu2 %v537_v0 }
  0x31   :  { %117 = vperm.xlu2 %429, %v580_v6  }
  0x37   :  { %109 = vperm.xlu0 %432, %v595_v10   ;;  %430 = vset.pattern.permute.xlu1 %v539_v7 }
  0x38   :  { %170 = vperm.xlu1 %430, %v568_v3  }
  0x39   :  { %431 = vset.pattern.permute.xlu2 %v539_v7 }
  0x3a   :  { %174 = vperm.xlu2 %431, %v575_v5  }
  0x3f   :  { %440 = vset.pattern.permute.xlu0 %v541_v52 }
  0x40   :  { %433 = vset.pattern.permute.xlu1 %v538_v1  ;;  %296 = vperm.xlu0 %440, %v595_v10  }
  0x41   :  { %62 = vperm.xlu1 %433, %v595_v10  }
  0x42   :  { %434 = vset.pattern.permute.xlu2 %v537_v0 }
  0x43   :  { %105 = vperm.xlu2 %434, %v585_v8  }
  0x48   :  { %441 = vset.pattern.permute.xlu0 %v540_v20 }
  0x49   :  { %435 = vset.pattern.permute.xlu1 %v539_v7  ;;  %210 = vperm.xlu0 %441, %v585_v8  }
  0x4a   :  { %162 = vperm.xlu1 %435, %v588_v9  }
  0x4b   :  { %436 = vset.pattern.permute.xlu2 %v539_v7 }
  0x4c   :  { %166 = vperm.xlu2 %436, %v580_v6  }
  0x51   :  { %234 = vperm.xlu0 %441, %v566_v2  }
  0x52   :  { %154 = vperm.xlu1 %435, %v585_v8  }
  0x54   :  { %158 = vperm.xlu2 %436, %v595_v10  }
  0x59   :  { %445 = vset.pattern.permute.xlu0 %v541_v52 }
  0x5a   :  { %437 = vset.pattern.permute.xlu1 %v540_v20  ;;  %320 = vperm.xlu0 %445, %v573_v4  }
  0x5b   :  { %214 = vperm.xlu1 %437, %v595_v10  }
  0x5c   :  { %438 = vset.pattern.permute.xlu2 %v540_v20 }
  0x5d   :  { %218 = vperm.xlu2 %438, %v588_v9  }
  0x63   :  { %222 = vperm.xlu1 %437, %v580_v6  }
  0x65   :  { %439 = vset.pattern.permute.xlu2 %v541_v52 }
  0x66   :  { %292 = vperm.xlu2 %439, %v585_v8  }
  0x68   :  { %v78_v11 = vpop.permute.xlu2 %77 }
  0x69   :  { %v100_v45 = vmul.f32 %v606_v18, %v78_v11 }
  0x6b   :  { %226 = vperm.xlu1 %437, %v568_v3  }
  0x6e   :  { %300 = vperm.xlu2 %439, %v588_v9  }
  0x70   :  { %v83_v12 = vpop.permute.xlu2 %82 }
  0x71   :  { %v101_v41 = vmul.f32 %v606_v18, %v83_v12 }
  0x73   :  { %230 = vperm.xlu1 %437, %v575_v5  }
  0x76   :  { %304 = vperm.xlu2 %439, %v580_v6  }
  0x79   :  { %v179_v15 = vpop.permute.xlu2 %178 }
  0x7b   :  { %442 = vset.pattern.permute.xlu1 %v541_v52 }
  0x7c   :  { %308 = vperm.xlu1 %442, %v568_v3  }
  0x7e   :  { %443 = vset.pattern.permute.xlu2 %v540_v20  ;;  %v203_v20 = vpack.c.bf16 %v575_v5, %v568_v3 }
  0x7f   :  { %v130_v13 = vpop.permute.xlu1 %129  ;;  %238 = vperm.xlu2 %443, %v573_v4  }
  0x80   :  { %v88_v14 = vpop.permute.xlu0 %87  ;;  %v143_v21 = vmul.f32 %v608_v19, %v130_v13  ;;  %v51_v13 = vld [vmem:[#allocation5] sm:$0x1] }
  0x81   :  { %v102_v22 = vmul.f32 %v606_v18, %v88_v14 }
  0x82   :  { %v68_v25 = vpop.permute.xlu2 %67 }
  0x83   :  { %v151_v26 = vadd.f32 %v143_v21, %v102_v22  ;;  %v98_v61 = vmul.f32 %v606_v18, %v68_v25  ;;  %v542_v22 = vmov 69  }
  0x84   :  { %312 = vperm.xlu1 %442, %v575_v5  }
  0x85   :  { %v191_v29 = vadd.f32 %v179_v15, %v151_v26 }
  0x87   :  { %v134_v16 = vpop.permute.xlu1 %133  ;;  %v199_v35 = vmax.f32 %v191_v29, 0.0  ;;  %444 = vset.pattern.permute.xlu2 %v541_v52 }
  0x88   :  { %v93_v17 = vpop.permute.xlu0 %92  ;;  %v144_v27 = vmul.f32 %v608_v19, %v134_v16  ;;  %316 = vperm.xlu2 %444, %v566_v2  }
  0x89   :  { %v103_v28 = vmul.f32 %v606_v18, %v93_v17 }
  0x8b   :  { %v152_v30 = vadd.f32 %v144_v27, %v103_v28  ;;  %v118_v34 = vpop.permute.xlu2 %117 }
  0x8c   :  { %v140_v56 = vmul.f32 %v608_v19, %v118_v34  ;;  %446 = vset.pattern.permute.xlu1 %v542_v22 }
  0x8d   :  { %346 = vperm.xlu1 %446, %v51_v13  }
  0x8f   :  { %v126_v23 = vpop.permute.xlu1 %125 }
  0x90   :  { %v73_v24 = vpop.permute.xlu0 %72  ;;  %v142_v38 = vmul.f32 %v608_v19, %v126_v23 }
  0x91   :  { %v99_v57 = vmul.f32 %v606_v18, %v73_v24 }
  0x92   :  { %v150_v43 = vadd.f32 %v142_v38, %v101_v41 }
  0x93   :  { %v148_v62 = vadd.f32 %v140_v56, %v99_v57 }
  0x94   :  { %v175_v42 = vpop.permute.xlu2 %174 }
  0x95   :  { %v190_v46 = vadd.f32 %v175_v42, %v150_v43 }
  0x97   :  { %v198_v50 = vmax.f32 %v190_v46, 0.0 }
  0x98   :  { %v619_v31 = vpop.permute.xlu0 %57  ;;  %v183_v32 = vpop.permute.xlu1 %182 }
  0x99   :  { %v192_v33 = vadd.f32 %v183_v32, %v152_v30  ;;  %v96_v23 = vmul.f32 %v606_v18, %v619_v31  ;;  %v201_v30 = vpack.c.bf16 %v595_v10, %v585_v8  ;;  %v202_v31 = vpack.c.bf16 %v580_v6, %v588_v9  ;;  %v52_v6 = vld [vmem:[#allocation5] sm:$0x3] }
  0x9a   :  { %v204_v32 = vpack.c.bf16 %v573_v4, %v566_v2  ;;  %v543_v8 = vmov 70  }
  0x9b   :  { %v200_v36 = vmax.f32 %v192_v33, 0.0  ;;  %448 = vset.pattern.permute.xlu0 %v543_v8  ;;  %447 = vset.pattern.permute.xlu2 %v543_v8 }
  0x9c   :  { %352 = vperm.xlu2 %447, %v52_v6  }
  0x9d   :  { %v208_v37 = vpack.c.bf16 %v200_v36, %v199_v35  ;;  %v106_v53 = vpop.permute.xlu2 %105 }
  0x9e   :  { %v137_v14 = vmul.f32 %v608_v19, %v106_v53 }
  0x9f   :  { %258 = vmatpush.bf16.msra.mxu0 %v208_v37  ;;  %398 = vmatpush.bf16.msra.mxu1 %v208_v37 }
  0xa0   :  { %399 = vmatpush.bf16.msra.mxu2 %v208_v37  ;;  %400 = vmatpush.bf16.msra.mxu3 %v208_v37  ;;  %v145_v26 = vadd.f32 %v137_v14, %v96_v23 }
  0xa1   :  { %v114_v39 = vpop.permute.xlu1 %113  ;;  %v122_v40 = vpop.permute.xlu0 %121 }
  0xa2   :  { %v141_v44 = vmul.f32 %v608_v19, %v122_v40  ;;  %v139_v58 = vmul.f32 %v608_v19, %v114_v39 }
  0xa4   :  { %v149_v47 = vadd.f32 %v141_v44, %v100_v45  ;;  %v147_v7 = vadd.f32 %v139_v58, %v98_v61 }
  0xa6   :  { %v167_v59 = vpop.permute.xlu2 %166 }
  0xa7   :  { %v188_v63 = vadd.f32 %v167_v59, %v148_v62 }
  0xa9   :  { %v110_v60 = vpop.permute.xlu0 %109  ;;  %v196_v15 = vmax.f32 %v188_v63, 0.0 }
  0xaa   :  { %v171_v48 = vpop.permute.xlu1 %170  ;;  %v138_v1 = vmul.f32 %v608_v19, %v110_v60 }
  0xab   :  { %v189_v49 = vadd.f32 %v171_v48, %v149_v47 }
  0xad   :  { %v197_v51 = vmax.f32 %v189_v49, 0.0 }
  0xae   :  { %v159_v21 = vpop.permute.xlu2 %158 }
  0xaf   :  { %v207_v54 = vpack.c.bf16 %v198_v50, %v197_v51 }
  0xb1   :  { %259 = vmatpush.bf16.msra.mxu0 %v207_v54  ;;  %401 = vmatpush.bf16.msra.mxu1 %v207_v54 }
  0xb2   :  { %402 = vmatpush.bf16.msra.mxu2 %v207_v54  ;;  %403 = vmatpush.bf16.msra.mxu3 %v207_v54  ;;  %v297_v34 = vpop.permute.xlu0 %296 }
  0xb3   :  { %v63_v55 = vpop.permute.xlu1 %62 }
  0xb4   :  { %v97_v0 = vmul.f32 %v606_v18, %v63_v55 }
  0xb6   :  { %v146_v16 = vadd.f32 %v138_v1, %v97_v0 }
  0xb7   :  { %v219_v3 = vpop.permute.xlu2 %218 }
  0xb8   :  { %v186_v25 = vadd.f32 %v159_v21, %v146_v16 }
  0xba   :  { %v194_v28 = vmax.f32 %v186_v25, 0.0 }
  0xbb   :  { %v211_v39 = vpop.permute.xlu0 %210 }
  0xbc   :  { %v163_v11 = vpop.permute.xlu1 %162 }
  0xbd   :  { %v187_v12 = vadd.f32 %v163_v11, %v147_v7 }
  0xbf   :  { %v195_v17 = vmax.f32 %v187_v12, 0.0 }
  0xc0   :  { %v293_v10 = vpop.permute.xlu2 %292 }
  0xc1   :  { %v206_v24 = vpack.c.bf16 %v196_v15, %v195_v17 }
  0xc3   :  { %260 = vmatpush.bf16.msra.mxu0 %v206_v24  ;;  %404 = vmatpush.bf16.msra.mxu1 %v206_v24  ;;  %v235_v53 = vpop.permute.xlu0 %234 }
  0xc4   :  { %405 = vmatpush.bf16.msra.mxu2 %v206_v24  ;;  %406 = vmatpush.bf16.msra.mxu3 %v206_v24  ;;  %v155_v19 = vpop.permute.xlu1 %154 }
  0xc5   :  { %v185_v27 = vadd.f32 %v155_v19, %v145_v26 }
  0xc7   :  { %v193_v29 = vmax.f32 %v185_v27, 0.0 }
  0xc8   :  { %v301_v33 = vpop.permute.xlu2 %300 }
  0xc9   :  { %v205_v18 = vpack.c.bf16 %v194_v28, %v193_v29 }
  0xcb   :  { %261 = vmatpush.bf16.msra.mxu0 %v205_v18  ;;  %407 = vmatpush.bf16.msra.mxu1 %v205_v18 }
  0xcc   :  { %408 = vmatpush.bf16.msra.mxu2 %v205_v18  ;;  %409 = vmatpush.bf16.msra.mxu3 %v205_v18  ;;  %v321_v23 = vpop.permute.xlu0 %320 }
  0xcd   :  { %v215_v9 = vpop.permute.xlu1 %214 }
  0xce   :  { %394 = vmatmul.msk.bf16.vlgmr.msra.gmra.mxu0 %vm241_vm0, %v201_v30  ;;  %395 = vmatmul.msk.bf16.vlgmr.msra.gmra.mxu1 %vm241_vm0, %v202_v31 }
  0xcf   :  { %396 = vmatmul.msk.bf16.vlgmr.msra.gmra.mxu2 %vm241_vm0, %v203_v20  ;;  %397 = vmatmul.msk.bf16.vlgmr.msra.gmra.mxu3 %vm241_vm0, %v204_v32 }
  0xd0   :  { %v305_v38 = vpop.permute.xlu2 %304 }
  0xd5   :  { %v223_v5 = vpop.permute.xlu1 %222 }
  0xd9   :  { %v239_v48 = vpop.permute.xlu2 %238 }
  0xdd   :  { %v227_v4 = vpop.permute.xlu1 %226 }
  0xe2   :  { %v317_v15 = vpop.permute.xlu2 %316 }
  0xe5   :  { %v231_v37 = vpop.permute.xlu1 %230 }
  0xee   :  { %v309_v49 = vpop.permute.xlu1 %308 }
  0xf6   :  { %v313_v16 = vpop.permute.xlu1 %312  ;;  %v353_v6 = vpop.permute.xlu2 %352 }
  0xff   :  { %v347_v20 = vpop.permute.xlu1 %346 }
 0x14b   :  { %v263_v35 = vpop.f32.mrf.mxu0  ;;  %v268_v36 = vpop.f32.mrf.mxu1 }
 0x14c   :  { %v264_v40 = vadd.f32 %v263_v35, %v211_v39  ;;  %v269_v41 = vadd.f32 %v268_v36, %v219_v3 }
 0x14e   :  { %v283_v45 = vmax.f32 %v264_v40, 0.0  ;;  %v285_v50 = vmax.f32 %v269_v41, 0.0 }
 0x150   :  { %v323_v54 = vmul.f32 %v293_v10, %v283_v45  ;;  %v325_v57 = vmul.f32 %v301_v33, %v285_v50 }
 0x152   :  { %v273_v42 = vpop.f32.mrf.mxu2  ;;  %v278_v43 = vpop.f32.mrf.mxu3 }
 0x153   :  { %v265_v2 = vpop.f32.mrf.mxu0  ;;  %v270_v44 = vpop.f32.mrf.mxu1  ;;  %v274_v51 = vadd.f32 %v273_v42, %v227_v4  ;;  %v279_v59 = vadd.f32 %v278_v43, %v235_v53 }
 0x154   :  { %v266_v46 = vadd.f32 %v265_v2, %v215_v9  ;;  %v271_v47 = vadd.f32 %v270_v44, %v223_v5 }
 0x155   :  { %v287_v58 = vmax.f32 %v274_v51, 0.0  ;;  %v289_v13 = vmax.f32 %v279_v59, 0.0 }
 0x156   :  { %v284_v52 = vmax.f32 %v266_v46, 0.0  ;;  %v286_v56 = vmax.f32 %v271_v47, 0.0 }
 0x157   :  { %v327_v12 = vmul.f32 %v309_v49, %v287_v58  ;;  %v329_v24 = vmul.f32 %v317_v15, %v289_v13 }
 0x158   :  { %v324_v55 = vmul.f32 %v297_v34, %v284_v52  ;;  %v326_v0 = vmul.f32 %v305_v38, %v286_v56 }
 0x15a   :  { %v331_v60 = vadd.f32 %v324_v55, %v323_v54  ;;  %v275_v61 = vpop.f32.mrf.mxu2  ;;  %v280_v62 = vpop.f32.mrf.mxu3 }
 0x15b   :  { %v276_v63 = vadd.f32 %v275_v61, %v231_v37  ;;  %v281_v7 = vadd.f32 %v280_v62, %v239_v48 }
 0x15c   :  { %v332_v1 = vadd.f32 %v331_v60, %v325_v57 }
 0x15d   :  { %v288_v11 = vmax.f32 %v276_v63, 0.0  ;;  %v290_v22 = vmax.f32 %v281_v7, 0.0 }
 0x15e   :  { %v333_v14 = vadd.f32 %v332_v1, %v326_v0 }
 0x15f   :  { %v328_v17 = vmul.f32 %v313_v16, %v288_v11  ;;  %v330_v26 = vmul.f32 %v321_v23, %v290_v22 }
 0x160   :  { %v334_v21 = vadd.f32 %v333_v14, %v327_v12 }
 0x162   :  { %v335_v25 = vadd.f32 %v334_v21, %v328_v17 }
 0x164   :  { %v336_v19 = vadd.f32 %v335_v25, %v329_v24 }
 0x166   :  { %v337_v27 = vadd.f32 %v336_v19, %v330_v26 }
 0x168   :  { %v338_v28 = vrot.slane %v337_v27, 4 }
 0x16a   :  { %v339_v29 = vadd.f32 %v338_v28, %v337_v27 }
 0x16c   :  { %v340_v18 = vrot.slane %v339_v29, 2 }
 0x16e   :  { %v341_v30 = vadd.f32 %v340_v18, %v339_v29 }
 0x170   :  { %v342_v31 = vrot.slane %v341_v30, 1 }
 0x172   :  { %v343_v32 = vadd.f32 %v342_v31, %v341_v30 }
 0x174   :  { %v349_v8 = vadd.f32 %v347_v20, %v343_v32 }
 0x176   :  { %v355_v9 = vperm.slane %v349_v8, 0 }
 0x178   :  { %v356_v3 = vmul.f32 %v355_v9, %v353_v6 }
 0x17a   :  { %v357_v5 = vsub.f32 0.0, %v356_v3 }
 0x17c   :  { %v358_v10 = vmul.f32 1.442695, %v357_v5 }
 0x17e   :  { %451 = vpow2.f32 %v358_v10 }
 0x184   :  { %v452_v4 = vpop.eup %451 }
 0x185   :  { %v360_v33 = vadd.f32 1.0, %v452_v4 }
 0x187   :  { %453 = vrcp.f32 %v360_v33  ;;  %v372_v37 = vand.u32 2147483648, %v360_v33  ;;  %v370_v39 = vand.u32 2147483647, %v360_v33  ;;  %vm366_vm2 = vweird.f32 %v360_v33 }
 0x189   :  { %v373_v41 = vor.u32 1.1754944e-38, %v372_v37  ;;  %vm371_vm4 = vcmp.eq.f32.partialorder %v370_v39, 8.507059e+37 }
 0x18d   :  { %v454_v34 = vpop.eup %453 }
 0x18e   :  { %v362_v35 = vmul.f32 %v454_v34, %v360_v33  ;;  %vm367_vm1 = vweird.f32 %v454_v34 }
 0x18f   :  { %vm368_vm3 = vmor %vm366_vm2, %vm367_vm1 }
 0x190   :  { %v363_v36 = vsub.f32 1.0, %v362_v35 }
 0x192   :  { %v364_v38 = vmul.f32 %v454_v34, %v363_v36 }
 0x194   :  { %v365_v40 = vadd.f32 %v454_v34, %v364_v38 }
 0x196   :  { %v369_v42 = vsel %vm368_vm3, %v454_v34, %v365_v40 }
 0x197   :  { %v374_v43 = vsel %vm371_vm4, %v373_v41, %v369_v42 }
 0x198   :  { %375 = vst [vmem:[#allocation7] sm:$0x3] %v374_v43 }
 0x199   :  { %386 = dma.vmem_to_hbm [thread:$0]  %s382_s1, 32, %s384_s23, [#allocation4]  }
 0x19a   :  { %531 = dma.done.wait [#allocation4], 32  }
 0x19b   :  { %532 = vsyncadd [#allocation4], 4294967264 }
 0x19c   :  { %391 = vsyncpa [#allocation3], 1 }
 0x19d   :  { %392 = vsyncpa [#allocation6], 1 }
 0x19e   :  { %393 = vsyncpa [#allocation4], 1 }

</bundles_post_ra>
